<compile_context>
chip_gen: v7x
topology: tpu7x:2x2x1
jax: 0.10.0
libtpu: 0.0.40
codegen_flags: <defaults>
</compile_context>

<pallas_src>
import functools

import jax
import jax.numpy as jnp
from jax.experimental import pallas as pl
from jax.experimental.pallas import tpu as pltpu


def _fft_l1_kernel(pred_ref, tgt_ref, fh_ref, fw_ref, out_ref, acc_ref, *,
                   H, W, Wr, BI, inner):
    i = pl.program_id(1)          # reduction ("arbitrary") axis

    @pl.when(i == 0)
    def _init():
        acc_ref[...] = jnp.zeros_like(acc_ref)

    fw = fw_ref[...]              # (W, 2*Wr)  bf16  [cos | sin] (rFFT half)
    fh = fh_ref[...]              # (2*H, H)   bf16  [cos ; sin]

    # ---- stage A: DFT along W for every row in the block (batched matmul) ----
    # uu_* = [X @ Cw | X @ Sw] = [U_re | U_im], shape (BI*H, 2*Wr)
    uu_p = jnp.dot(pred_ref[...], fw,
                   preferred_element_type=jnp.float32).astype(jnp.bfloat16)
    uu_t = jnp.dot(tgt_ref[...], fw,
                   preferred_element_type=jnp.float32).astype(jnp.bfloat16)

    def magnitude(u):             # u: (H, 2*Wr) = [U_re | U_im] of one image
        # Single MXU matmul yields all four products:
        #   [[Ch@U_re, Ch@U_im],
        #    [Sh@U_re, Sh@U_im]]
        prod = jnp.dot(fh, u, preferred_element_type=jnp.float32)   # (2H, 2Wr)
        c_re = prod[:H, :Wr]
        c_im = prod[:H, Wr:]
        s_re = prod[H:, :Wr]
        s_im = prod[H:, Wr:]
        y_re = c_re - s_im
        y_im = c_im + s_re
        return jnp.sqrt(y_re * y_re + y_im * y_im)

    # ---- stage B: DFT along H per image; accumulate |mag_p - mag_t| (VPU) ----
    for b in range(BI):
        mp = magnitude(uu_p[b * H:(b + 1) * H, :])
        mt = magnitude(uu_t[b * H:(b + 1) * H, :])
        acc_ref[...] += jnp.abs(mp - mt)

    # ---- last step only: weighted cross-lane reduction + scalar write ----
    @pl.when(i == inner - 1)
    def _finalize():
        col = jax.lax.broadcasted_iota(jnp.int32, (H, Wr), 1)
        if W % 2 == 0:
            wcol = jnp.where((col == 0) | (col == W // 2), 1.0, 2.0)
        else:
            wcol = jnp.where(col == 0, 1.0, 2.0)
        out_ref[...] = jnp.sum(acc_ref[...] * wcol).reshape(1, 1, 1)


def fft_l1_loss(pred, target, block_images=None):
    """Equivalent of FFTLoss.forward: mean(| |fft2(pred)| - |fft2(target)| |)."""
    assert pred.shape == target.shape and pred.ndim == 4
    B, C, H, W = pred.shape
    n = B * C
    Wr = W // 2 + 1                            # rFFT half-spectrum width

    # ---- images per grid step: make the batched matmul MXU-shaped ----
    if block_images is None:
        bi = max(1, min(512 // max(H, 1), 64))
        bi = min(bi, max(1, -(-n // 2)))
    else:
        bi = block_images
    while (bi * H) % 8 != 0:                   # sublane-aligned row block
        bi *= 2
    inner = -(-n // (2 * bi))                  # reduction steps per core slice
    n_pad = 2 * bi * inner                     # zero-pad images: |0-0| adds 0

    p = pred.reshape(n, H, W).astype(jnp.float32)
    t = target.reshape(n, H, W).astype(jnp.float32)
    if n_pad != n:
        pad = ((0, n_pad - n), (0, 0), (0, 0))
        p = jnp.pad(p, pad)
        t = jnp.pad(t, pad)
    p = p.reshape(n_pad * H, W).astype(jnp.bfloat16)
    t = t.reshape(n_pad * H, W).astype(jnp.bfloat16)

    # ---- packed cos/sin DFT matrices (bf16 operands, fp32 accumulation) ----
    kH = jnp.arange(H, dtype=jnp.float32)
    ang_h = (-2.0 * jnp.pi / H) * jnp.outer(kH, kH)                  # (H, H)
    fh = jnp.concatenate([jnp.cos(ang_h), jnp.sin(ang_h)], axis=0)   # (2H, H)
    fh = fh.astype(jnp.bfloat16)

    kW = jnp.arange(W, dtype=jnp.float32)
    ang_w = (-2.0 * jnp.pi / W) * jnp.outer(kW, kW[:Wr])             # (W, Wr)
    fw = jnp.concatenate([jnp.cos(ang_w), jnp.sin(ang_w)], axis=1)   # (W, 2Wr)
    fw = fw.astype(jnp.bfloat16)

    kernel = functools.partial(_fft_l1_kernel, H=H, W=W, Wr=Wr, BI=bi,
                               inner=inner)

    out = pl.pallas_call(
        kernel,
        out_shape=jax.ShapeDtypeStruct((2, 1, 1), jnp.float32),
        grid_spec=pltpu.PrefetchScalarGridSpec(
            num_scalar_prefetch=0,
            grid=(2, inner),                               # (parallel, reduce)
            in_specs=[
                pl.BlockSpec((bi * H, W), lambda c, i: (c * inner + i, 0)),
                pl.BlockSpec((bi * H, W), lambda c, i: (c * inner + i, 0)),
                pl.BlockSpec((2 * H, H), lambda c, i: (0, 0)),   # resident DFT (rows)
                pl.BlockSpec((W, 2 * Wr), lambda c, i: (0, 0)),  # resident DFT (cols, rFFT)
            ],
            out_specs=pl.BlockSpec((1, 1, 1), lambda c, i: (c, 0, 0)),
            scratch_shapes=[pltpu.VMEM((H, Wr), jnp.float32)],
        ),
        compiler_params=pltpu.CompilerParams(
            dimension_semantics=("parallel", "arbitrary"),
            vmem_limit_bytes=48 * 1024 * 1024,
        ),
    )(p, t, fh, fw)

    # L1Loss default reduction='mean' over all (real-size) elements
    return jnp.sum(out) / jnp.float32(n * H * W)


if __name__ == "__main__":
    key = jax.random.PRNGKey(0)
    k1, k2 = jax.random.split(key)
    pred = jax.random.normal(k1, (2, 4, 16, 16), dtype=jnp.float32)
    target = jax.random.normal(k2, (2, 4, 16, 16), dtype=jnp.float32)

    loss = jax.jit(fft_l1_loss)(pred, target)
    loss = jax.block_until_ready(loss)

    # reference check (pure JAX FFT, fp32); bf16 MXU operands => loose tolerance
    ref = jnp.mean(jnp.abs(jnp.abs(jnp.fft.fft2(pred, axes=(-2, -1)))
                           - jnp.abs(jnp.fft.fft2(target, axes=(-2, -1)))))
    assert jnp.allclose(loss, ref, rtol=2e-2, atol=2e-2), (loss, ref)

    print("KERNEL_OK")
</pallas_src>

<mosaic_0001>
module attributes {stable_mosaic.version = 11 : i64} {
  func.func @_fft_l1_kernel(%arg0: i32, %arg1: i32, %arg2: memref<64x16xbf16, #tpu.memory_space<vmem>>, %arg3: memref<64x16xbf16, #tpu.memory_space<vmem>>, %arg4: memref<32x16xbf16, #tpu.memory_space<vmem>>, %arg5: memref<16x18xbf16, #tpu.memory_space<vmem>>, %arg6: memref<1x1x1xf32, #tpu.memory_space<vmem>>, %arg7: memref<16x9xf32, #tpu.memory_space<vmem>>) attributes {dimension_semantics = [#tpu.dimension_semantics<parallel>, #tpu.dimension_semantics<arbitrary>], iteration_bounds = array<i64: 2, 1>, scalar_prefetch = 0 : i64, scratch_operands = 1 : i64, tpu.core_type = #tpu.core_type<tc>, window_params = [{transform_indices = @transform_0, window_bounds = array<i64: 64, 16>}, {transform_indices = @transform_1, window_bounds = array<i64: 64, 16>}, {pipeline_mode = #tpu.pipeline_mode<synchronous>, transform_indices = @transform_2, window_bounds = array<i64: 32, 16>}, {pipeline_mode = #tpu.pipeline_mode<synchronous>, transform_indices = @transform_3, window_bounds = array<i64: 16, 18>}, {transform_indices = @transform_4, window_bounds = array<i64: 1, 1, 1>}]} {
    %c0_i32 = arith.constant 0 : i32
    %0 = arith.cmpi eq, %arg1, %c0_i32 : i32
    %1 = arith.extui %0 : i1 to i32
    %c0_i32_0 = arith.constant 0 : i32
    %2 = arith.cmpi ne, %1, %c0_i32_0 : i32
    scf.if %2 {
      %cst_35 = arith.constant 0.000000e+00 : f32
      %130 = vector.broadcast %cst_35 : f32 to vector<16x9xf32>
      %c0_36 = arith.constant 0 : index
      %c0_37 = arith.constant 0 : index
      %131 = vector.load %arg7[%c0_36, %c0_37] : memref<16x9xf32, #tpu.memory_space<vmem>>, vector<16x9xf32>
      tpu.vector_store %arg7[%c0_36, %c0_37], %130 {strides = array<i32>} : memref<16x9xf32, #tpu.memory_space<vmem>>, vector<16x9xf32>,
    } else {
    }
    %c0 = arith.constant 0 : index
    %c0_1 = arith.constant 0 : index
    %3 = vector.load %arg5[%c0, %c0_1] : memref<16x18xbf16, #tpu.memory_space<vmem>>, vector<16x18xbf16>
    %c0_2 = arith.constant 0 : index
    %c0_3 = arith.constant 0 : index
    %4 = vector.load %arg4[%c0_2, %c0_3] : memref<32x16xbf16, #tpu.memory_space<vmem>>, vector<32x16xbf16>
    %c0_4 = arith.constant 0 : index
    %c0_5 = arith.constant 0 : index
    %5 = vector.load %arg2[%c0_4, %c0_5] : memref<64x16xbf16, #tpu.memory_space<vmem>>, vector<64x16xbf16>
    %cst = arith.constant dense<0.000000e+00> : vector<64x18xf32>
    %6 = tpu.matmul %5, %3, %cst {dimension_numbers = #tpu.dot_dimension_numbers<[1], [0], [0], [1], [0, 0, 1, 1], [], []>} : vector<64x16xbf16>, vector<16x18xbf16>, vector<64x18xf32> -> vector<64x18xf32>
    %7 = arith.truncf %6 : vector<64x18xf32> to vector<64x18xbf16>
    %c0_6 = arith.constant 0 : index
    %c0_7 = arith.constant 0 : index
    %8 = vector.load %arg3[%c0_6, %c0_7] : memref<64x16xbf16, #tpu.memory_space<vmem>>, vector<64x16xbf16>
    %cst_8 = arith.constant dense<0.000000e+00> : vector<64x18xf32>
    %9 = tpu.matmul %8, %3, %cst_8 {dimension_numbers = #tpu.dot_dimension_numbers<[1], [0], [0], [1], [0, 0, 1, 1], [], []>} : vector<64x16xbf16>, vector<16x18xbf16>, vector<64x18xf32> -> vector<64x18xf32>
    %10 = arith.truncf %9 : vector<64x18xf32> to vector<64x18xbf16>
    %11 = vector.extract_strided_slice %7 {offsets = [0, 0], sizes = [16, 18], strides = [1, 1]} : vector<64x18xbf16> to vector<16x18xbf16>
    %cst_9 = arith.constant dense<0.000000e+00> : vector<32x18xf32>
    %12 = tpu.matmul %4, %11, %cst_9 {dimension_numbers = #tpu.dot_dimension_numbers<[1], [0], [0], [1], [0, 0, 1, 1], [], []>} : vector<32x16xbf16>, vector<16x18xbf16>, vector<32x18xf32> -> vector<32x18xf32>
    %13 = vector.extract_strided_slice %12 {offsets = [0, 0], sizes = [16, 9], strides = [1, 1]} : vector<32x18xf32> to vector<16x9xf32>
    %14 = vector.extract_strided_slice %12 {offsets = [0, 9], sizes = [16, 9], strides = [1, 1]} : vector<32x18xf32> to vector<16x9xf32>
    %15 = vector.extract_strided_slice %12 {offsets = [16, 0], sizes = [16, 9], strides = [1, 1]} : vector<32x18xf32> to vector<16x9xf32>
    %16 = vector.extract_strided_slice %12 {offsets = [16, 9], sizes = [16, 9], strides = [1, 1]} : vector<32x18xf32> to vector<16x9xf32>
    %17 = arith.subf %13, %16 : vector<16x9xf32>
    %18 = arith.addf %14, %15 : vector<16x9xf32>
    %19 = arith.mulf %17, %17 : vector<16x9xf32>
    %20 = arith.mulf %18, %18 : vector<16x9xf32>
    %21 = arith.addf %19, %20 : vector<16x9xf32>
    %22 = math.sqrt %21 : vector<16x9xf32>
    %23 = vector.extract_strided_slice %10 {offsets = [0, 0], sizes = [16, 18], strides = [1, 1]} : vector<64x18xbf16> to vector<16x18xbf16>
    %cst_10 = arith.constant dense<0.000000e+00> : vector<32x18xf32>
    %24 = tpu.matmul %4, %23, %cst_10 {dimension_numbers = #tpu.dot_dimension_numbers<[1], [0], [0], [1], [0, 0, 1, 1], [], []>} : vector<32x16xbf16>, vector<16x18xbf16>, vector<32x18xf32> -> vector<32x18xf32>
    %25 = vector.extract_strided_slice %24 {offsets = [0, 0], sizes = [16, 9], strides = [1, 1]} : vector<32x18xf32> to vector<16x9xf32>
    %26 = vector.extract_strided_slice %24 {offsets = [0, 9], sizes = [16, 9], strides = [1, 1]} : vector<32x18xf32> to vector<16x9xf32>
    %27 = vector.extract_strided_slice %24 {offsets = [16, 0], sizes = [16, 9], strides = [1, 1]} : vector<32x18xf32> to vector<16x9xf32>
    %28 = vector.extract_strided_slice %24 {offsets = [16, 9], sizes = [16, 9], strides = [1, 1]} : vector<32x18xf32> to vector<16x9xf32>
    %29 = arith.subf %25, %28 : vector<16x9xf32>
    %30 = arith.addf %26, %27 : vector<16x9xf32>
    %31 = arith.mulf %29, %29 : vector<16x9xf32>
    %32 = arith.mulf %30, %30 : vector<16x9xf32>
    %33 = arith.addf %31, %32 : vector<16x9xf32>
    %34 = math.sqrt %33 : vector<16x9xf32>
    %c0_11 = arith.constant 0 : index
    %c0_12 = arith.constant 0 : index
    %35 = vector.load %arg7[%c0_11, %c0_12] : memref<16x9xf32, #tpu.memory_space<vmem>>, vector<16x9xf32>
    %36 = arith.subf %22, %34 : vector<16x9xf32>
    %37 = math.absf %36 : vector<16x9xf32>
    %38 = arith.addf %35, %37 : vector<16x9xf32>
    %c0_13 = arith.constant 0 : index
    %c0_14 = arith.constant 0 : index
    %39 = vector.load %arg7[%c0_13, %c0_14] : memref<16x9xf32, #tpu.memory_space<vmem>>, vector<16x9xf32>
    tpu.vector_store %arg7[%c0_13, %c0_14], %38 {strides = array<i32>} : memref<16x9xf32, #tpu.memory_space<vmem>>, vector<16x9xf32>,
    %40 = vector.extract_strided_slice %7 {offsets = [16, 0], sizes = [16, 18], strides = [1, 1]} : vector<64x18xbf16> to vector<16x18xbf16>
    %cst_15 = arith.constant dense<0.000000e+00> : vector<32x18xf32>
    %41 = tpu.matmul %4, %40, %cst_15 {dimension_numbers = #tpu.dot_dimension_numbers<[1], [0], [0], [1], [0, 0, 1, 1], [], []>} : vector<32x16xbf16>, vector<16x18xbf16>, vector<32x18xf32> -> vector<32x18xf32>
    %42 = vector.extract_strided_slice %41 {offsets = [0, 0], sizes = [16, 9], strides = [1, 1]} : vector<32x18xf32> to vector<16x9xf32>
    %43 = vector.extract_strided_slice %41 {offsets = [0, 9], sizes = [16, 9], strides = [1, 1]} : vector<32x18xf32> to vector<16x9xf32>
    %44 = vector.extract_strided_slice %41 {offsets = [16, 0], sizes = [16, 9], strides = [1, 1]} : vector<32x18xf32> to vector<16x9xf32>
    %45 = vector.extract_strided_slice %41 {offsets = [16, 9], sizes = [16, 9], strides = [1, 1]} : vector<32x18xf32> to vector<16x9xf32>
    %46 = arith.subf %42, %45 : vector<16x9xf32>
    %47 = arith.addf %43, %44 : vector<16x9xf32>
    %48 = arith.mulf %46, %46 : vector<16x9xf32>
    %49 = arith.mulf %47, %47 : vector<16x9xf32>
    %50 = arith.addf %48, %49 : vector<16x9xf32>
    %51 = math.sqrt %50 : vector<16x9xf32>
    %52 = vector.extract_strided_slice %10 {offsets = [16, 0], sizes = [16, 18], strides = [1, 1]} : vector<64x18xbf16> to vector<16x18xbf16>
    %cst_16 = arith.constant dense<0.000000e+00> : vector<32x18xf32>
    %53 = tpu.matmul %4, %52, %cst_16 {dimension_numbers = #tpu.dot_dimension_numbers<[1], [0], [0], [1], [0, 0, 1, 1], [], []>} : vector<32x16xbf16>, vector<16x18xbf16>, vector<32x18xf32> -> vector<32x18xf32>
    %54 = vector.extract_strided_slice %53 {offsets = [0, 0], sizes = [16, 9], strides = [1, 1]} : vector<32x18xf32> to vector<16x9xf32>
    %55 = vector.extract_strided_slice %53 {offsets = [0, 9], sizes = [16, 9], strides = [1, 1]} : vector<32x18xf32> to vector<16x9xf32>
    %56 = vector.extract_strided_slice %53 {offsets = [16, 0], sizes = [16, 9], strides = [1, 1]} : vector<32x18xf32> to vector<16x9xf32>
    %57 = vector.extract_strided_slice %53 {offsets = [16, 9], sizes = [16, 9], strides = [1, 1]} : vector<32x18xf32> to vector<16x9xf32>
    %58 = arith.subf %54, %57 : vector<16x9xf32>
    %59 = arith.addf %55, %56 : vector<16x9xf32>
    %60 = arith.mulf %58, %58 : vector<16x9xf32>
    %61 = arith.mulf %59, %59 : vector<16x9xf32>
    %62 = arith.addf %60, %61 : vector<16x9xf32>
    %63 = math.sqrt %62 : vector<16x9xf32>
    %c0_17 = arith.constant 0 : index
    %c0_18 = arith.constant 0 : index
    %64 = vector.load %arg7[%c0_17, %c0_18] : memref<16x9xf32, #tpu.memory_space<vmem>>, vector<16x9xf32>
    %65 = arith.subf %51, %63 : vector<16x9xf32>
    %66 = math.absf %65 : vector<16x9xf32>
    %67 = arith.addf %64, %66 : vector<16x9xf32>
    %c0_19 = arith.constant 0 : index
    %c0_20 = arith.constant 0 : index
    %68 = vector.load %arg7[%c0_19, %c0_20] : memref<16x9xf32, #tpu.memory_space<vmem>>, vector<16x9xf32>
    tpu.vector_store %arg7[%c0_19, %c0_20], %67 {strides = array<i32>} : memref<16x9xf32, #tpu.memory_space<vmem>>, vector<16x9xf32>,
    %69 = vector.extract_strided_slice %7 {offsets = [32, 0], sizes = [16, 18], strides = [1, 1]} : vector<64x18xbf16> to vector<16x18xbf16>
    %cst_21 = arith.constant dense<0.000000e+00> : vector<32x18xf32>
    %70 = tpu.matmul %4, %69, %cst_21 {dimension_numbers = #tpu.dot_dimension_numbers<[1], [0], [0], [1], [0, 0, 1, 1], [], []>} : vector<32x16xbf16>, vector<16x18xbf16>, vector<32x18xf32> -> vector<32x18xf32>
    %71 = vector.extract_strided_slice %70 {offsets = [0, 0], sizes = [16, 9], strides = [1, 1]} : vector<32x18xf32> to vector<16x9xf32>
    %72 = vector.extract_strided_slice %70 {offsets = [0, 9], sizes = [16, 9], strides = [1, 1]} : vector<32x18xf32> to vector<16x9xf32>
    %73 = vector.extract_strided_slice %70 {offsets = [16, 0], sizes = [16, 9], strides = [1, 1]} : vector<32x18xf32> to vector<16x9xf32>
    %74 = vector.extract_strided_slice %70 {offsets = [16, 9], sizes = [16, 9], strides = [1, 1]} : vector<32x18xf32> to vector<16x9xf32>
    %75 = arith.subf %71, %74 : vector<16x9xf32>
    %76 = arith.addf %72, %73 : vector<16x9xf32>
    %77 = arith.mulf %75, %75 : vector<16x9xf32>
    %78 = arith.mulf %76, %76 : vector<16x9xf32>
    %79 = arith.addf %77, %78 : vector<16x9xf32>
    %80 = math.sqrt %79 : vector<16x9xf32>
    %81 = vector.extract_strided_slice %10 {offsets = [32, 0], sizes = [16, 18], strides = [1, 1]} : vector<64x18xbf16> to vector<16x18xbf16>
    %cst_22 = arith.constant dense<0.000000e+00> : vector<32x18xf32>
    %82 = tpu.matmul %4, %81, %cst_22 {dimension_numbers = #tpu.dot_dimension_numbers<[1], [0], [0], [1], [0, 0, 1, 1], [], []>} : vector<32x16xbf16>, vector<16x18xbf16>, vector<32x18xf32> -> vector<32x18xf32>
    %83 = vector.extract_strided_slice %82 {offsets = [0, 0], sizes = [16, 9], strides = [1, 1]} : vector<32x18xf32> to vector<16x9xf32>
    %84 = vector.extract_strided_slice %82 {offsets = [0, 9], sizes = [16, 9], strides = [1, 1]} : vector<32x18xf32> to vector<16x9xf32>
    %85 = vector.extract_strided_slice %82 {offsets = [16, 0], sizes = [16, 9], strides = [1, 1]} : vector<32x18xf32> to vector<16x9xf32>
    %86 = vector.extract_strided_slice %82 {offsets = [16, 9], sizes = [16, 9], strides = [1, 1]} : vector<32x18xf32> to vector<16x9xf32>
    %87 = arith.subf %83, %86 : vector<16x9xf32>
    %88 = arith.addf %84, %85 : vector<16x9xf32>
    %89 = arith.mulf %87, %87 : vector<16x9xf32>
    %90 = arith.mulf %88, %88 : vector<16x9xf32>
    %91 = arith.addf %89, %90 : vector<16x9xf32>
    %92 = math.sqrt %91 : vector<16x9xf32>
    %c0_23 = arith.constant 0 : index
    %c0_24 = arith.constant 0 : index
    %93 = vector.load %arg7[%c0_23, %c0_24] : memref<16x9xf32, #tpu.memory_space<vmem>>, vector<16x9xf32>
    %94 = arith.subf %80, %92 : vector<16x9xf32>
    %95 = math.absf %94 : vector<16x9xf32>
    %96 = arith.addf %93, %95 : vector<16x9xf32>
    %c0_25 = arith.constant 0 : index
    %c0_26 = arith.constant 0 : index
    %97 = vector.load %arg7[%c0_25, %c0_26] : memref<16x9xf32, #tpu.memory_space<vmem>>, vector<16x9xf32>
    tpu.vector_store %arg7[%c0_25, %c0_26], %96 {strides = array<i32>} : memref<16x9xf32, #tpu.memory_space<vmem>>, vector<16x9xf32>,
    %98 = vector.extract_strided_slice %7 {offsets = [48, 0], sizes = [16, 18], strides = [1, 1]} : vector<64x18xbf16> to vector<16x18xbf16>
    %cst_27 = arith.constant dense<0.000000e+00> : vector<32x18xf32>
    %99 = tpu.matmul %4, %98, %cst_27 {dimension_numbers = #tpu.dot_dimension_numbers<[1], [0], [0], [1], [0, 0, 1, 1], [], []>} : vector<32x16xbf16>, vector<16x18xbf16>, vector<32x18xf32> -> vector<32x18xf32>
    %100 = vector.extract_strided_slice %99 {offsets = [0, 0], sizes = [16, 9], strides = [1, 1]} : vector<32x18xf32> to vector<16x9xf32>
    %101 = vector.extract_strided_slice %99 {offsets = [0, 9], sizes = [16, 9], strides = [1, 1]} : vector<32x18xf32> to vector<16x9xf32>
    %102 = vector.extract_strided_slice %99 {offsets = [16, 0], sizes = [16, 9], strides = [1, 1]} : vector<32x18xf32> to vector<16x9xf32>
    %103 = vector.extract_strided_slice %99 {offsets = [16, 9], sizes = [16, 9], strides = [1, 1]} : vector<32x18xf32> to vector<16x9xf32>
    %104 = arith.subf %100, %103 : vector<16x9xf32>
    %105 = arith.addf %101, %102 : vector<16x9xf32>
    %106 = arith.mulf %104, %104 : vector<16x9xf32>
    %107 = arith.mulf %105, %105 : vector<16x9xf32>
    %108 = arith.addf %106, %107 : vector<16x9xf32>
    %109 = math.sqrt %108 : vector<16x9xf32>
    %110 = vector.extract_strided_slice %10 {offsets = [48, 0], sizes = [16, 18], strides = [1, 1]} : vector<64x18xbf16> to vector<16x18xbf16>
    %cst_28 = arith.constant dense<0.000000e+00> : vector<32x18xf32>
    %111 = tpu.matmul %4, %110, %cst_28 {dimension_numbers = #tpu.dot_dimension_numbers<[1], [0], [0], [1], [0, 0, 1, 1], [], []>} : vector<32x16xbf16>, vector<16x18xbf16>, vector<32x18xf32> -> vector<32x18xf32>
    %112 = vector.extract_strided_slice %111 {offsets = [0, 0], sizes = [16, 9], strides = [1, 1]} : vector<32x18xf32> to vector<16x9xf32>
    %113 = vector.extract_strided_slice %111 {offsets = [0, 9], sizes = [16, 9], strides = [1, 1]} : vector<32x18xf32> to vector<16x9xf32>
    %114 = vector.extract_strided_slice %111 {offsets = [16, 0], sizes = [16, 9], strides = [1, 1]} : vector<32x18xf32> to vector<16x9xf32>
    %115 = vector.extract_strided_slice %111 {offsets = [16, 9], sizes = [16, 9], strides = [1, 1]} : vector<32x18xf32> to vector<16x9xf32>
    %116 = arith.subf %112, %115 : vector<16x9xf32>
    %117 = arith.addf %113, %114 : vector<16x9xf32>
    %118 = arith.mulf %116, %116 : vector<16x9xf32>
    %119 = arith.mulf %117, %117 : vector<16x9xf32>
    %120 = arith.addf %118, %119 : vector<16x9xf32>
    %121 = math.sqrt %120 : vector<16x9xf32>
    %c0_29 = arith.constant 0 : index
    %c0_30 = arith.constant 0 : index
    %122 = vector.load %arg7[%c0_29, %c0_30] : memref<16x9xf32, #tpu.memory_space<vmem>>, vector<16x9xf32>
    %123 = arith.subf %109, %121 : vector<16x9xf32>
    %124 = math.absf %123 : vector<16x9xf32>
    %125 = arith.addf %122, %124 : vector<16x9xf32>
    %c0_31 = arith.constant 0 : index
    %c0_32 = arith.constant 0 : index
    %126 = vector.load %arg7[%c0_31, %c0_32] : memref<16x9xf32, #tpu.memory_space<vmem>>, vector<16x9xf32>
    tpu.vector_store %arg7[%c0_31, %c0_32], %125 {strides = array<i32>} : memref<16x9xf32, #tpu.memory_space<vmem>>, vector<16x9xf32>,
    %c0_i32_33 = arith.constant 0 : i32
    %127 = arith.cmpi eq, %arg1, %c0_i32_33 : i32
    %128 = arith.extui %127 : i1 to i32
    %c0_i32_34 = arith.constant 0 : i32
    %129 = arith.cmpi ne, %128, %c0_i32_34 : i32
    scf.if %129 {
      %130 = tpu.iota {dimensions = array<i32: 1>} : vector<16x9xi32>
      %c0_i32_35 = arith.constant 0 : i32
      %131 = vector.broadcast %c0_i32_35 : i32 to vector<16x9xi32>
      %132 = arith.cmpi eq, %130, %131 : vector<16x9xi32>
      %c8_i32 = arith.constant 8 : i32
      %133 = vector.broadcast %c8_i32 : i32 to vector<16x9xi32>
      %134 = arith.cmpi eq, %130, %133 : vector<16x9xi32>
      %135 = arith.ori %132, %134 : vector<16x9xi1>
      %cst_36 = arith.constant 1.000000e+00 : f32
      %cst_37 = arith.constant 2.000000e+00 : f32
      %136 = vector.broadcast %cst_36 : f32 to vector<16x9xf32>
      %137 = vector.broadcast %cst_37 : f32 to vector<16x9xf32>
      %138 = arith.select %135, %136, %137 : vector<16x9xi1>, vector<16x9xf32>
      %c0_38 = arith.constant 0 : index
      %c0_39 = arith.constant 0 : index
      %139 = vector.load %arg7[%c0_38, %c0_39] : memref<16x9xf32, #tpu.memory_space<vmem>>, vector<16x9xf32>
      %140 = arith.mulf %139, %138 : vector<16x9xf32>
      %141 = vector.shape_cast %140 : vector<16x9xf32> to vector<1x16x9xf32>
      %cst_40 = arith.constant dense<0.000000e+00> : vector<1xf32>
      %142 = vector.multi_reduction <add>, %141, %cst_40 [1, 2] : vector<1x16x9xf32> to vector<1xf32>
      %143 = vector.shape_cast %142 : vector<1xf32> to vector<1x1x1xf32>
      %144 = vector.extract %143[0, 0, 0] : f32 from vector<1x1x1xf32>
      %145 = vector.broadcast %144 : f32 to vector<1x1x1xf32>
      %c0_41 = arith.constant 0 : index
      %c0_42 = arith.constant 0 : index
      %c0_43 = arith.constant 0 : index
      %146 = vector.load %arg6[%c0_41, %c0_42, %c0_43] : memref<1x1x1xf32, #tpu.memory_space<vmem>>, vector<1x1x1xf32>
      tpu.vector_store %arg6[%c0_41, %c0_42, %c0_43], %145 {strides = array<i32>} : memref<1x1x1xf32, #tpu.memory_space<vmem>>, vector<1x1x1xf32>,
    } else {
    }
    return
  }
  func.func @transform_0(%arg0: i32, %arg1: i32) -> (i32, i32) {
    %c1_i32 = arith.constant 1 : i32
    %0 = arith.muli %arg0, %c1_i32 : i32
    %1 = arith.addi %0, %arg1 : i32
    %c0_i32 = arith.constant 0 : i32
    %c0_i32_0 = arith.constant 0 : i32
    return %1, %c0_i32 : i32, i32
  }
  func.func @transform_1(%arg0: i32, %arg1: i32) -> (i32, i32) {
    %c1_i32 = arith.constant 1 : i32
    %0 = arith.muli %arg0, %c1_i32 : i32
    %1 = arith.addi %0, %arg1 : i32
    %c0_i32 = arith.constant 0 : i32
    %c0_i32_0 = arith.constant 0 : i32
    return %1, %c0_i32 : i32, i32
  }
  func.func @transform_2(%arg0: i32, %arg1: i32) -> (i32, i32) {
    %c0_i32 = arith.constant 0 : i32
    %c0_i32_0 = arith.constant 0 : i32
    %c0_i32_1 = arith.constant 0 : i32
    return %c0_i32, %c0_i32_0 : i32, i32
  }
  func.func @transform_3(%arg0: i32, %arg1: i32) -> (i32, i32) {
    %c0_i32 = arith.constant 0 : i32
    %c0_i32_0 = arith.constant 0 : i32
    %c0_i32_1 = arith.constant 0 : i32
    return %c0_i32, %c0_i32_0 : i32, i32
  }
  func.func @transform_4(%arg0: i32, %arg1: i32) -> (i32, i32, i32) {
    %c0_i32 = arith.constant 0 : i32
    %c0_i32_0 = arith.constant 0 : i32
    %c0_i32_1 = arith.constant 0 : i32
    return %arg0, %c0_i32, %c0_i32_0 : i32, i32, i32
  }
}

</mosaic_0001>

<bundles_post_ra>
// kernel: fft_l1_loss.1
= control target key start
LH: loop header
LB: loop body
LE: loop exit
PB: predicated region body
PF: predicated region fallthrough
CT: control target
= control target key end

     0   :  { %s1669_s15 = smov 0   ;;  %s1671_s16 = smov 0   ;;  %s1990_s0 = inlined_call_operand.vmem [shape: bf16[128,16], index: 0, kind: input, shape index: {}]   ;;  %s1991_s1 = inlined_call_operand.vmem [shape: bf16[128,16], index: 1, kind: input, shape index: {}]   ;;  %s1992_s2 = inlined_call_operand.vmem [shape: bf16[32,16], index: 2, kind: input, shape index: {}]   ;;  %s1993_s3 = inlined_call_operand.vmem [shape: bf16[16,18], index: 3, kind: input, shape index: {}]   ;;  %s1994_s4 = inlined_call_operand.vmem [shape: f32[2,1,1], index: 4, kind: output, shape index: {}]  }
   0x1   :  { %s1673_s17 = smov 0  }
   0x2 LB: > { %s26_s18 = sadd.s32 1, %s1634_s16  ;;  %p1399_p0 = scmp.ge.s32.totalorder %s1638_s17, 1  ;;  %s1638_s17 = sphi %s1673_s17, %s14_s17   ;;  %s1634_s16 = sphi %s1671_s16, %s1996_s16   ;;  %s1630_s15 = sphi %s1669_s15, %s1995_s15  }
   0x3   : > { %p28_p1 = scmp.ge.s32.totalorder %s26_s18, 2  ;;  %p194_p2 = scmp.lt.s32.totalorder %s1638_s17, 3 }
   0x5   : > { %s1998_s18 = smov (%p28_p1, %s26_s18), 0  ;;  %p195_p3 = pnand %p1399_p0, %p194_p2 }
   0x6   : > { %v1573_v0 = vld [vmem:[%s1993_s3] sm:$0xff] (!%p195_p3)   ;;  %s1400_s21 = sshll.u32 (!%p195_p3), %s1630_s15, 3  ;;  %vm292_vm0 = vcmask (!%p195_p3), 130048   ;;  %v1583_v22 = vld [vmem:[%s1992_s2 + $0x8] sm:$0xff] (!%p195_p3)   ;;  %s1640_s7 = smov (!%p195_p3), 9   ;;  %vm249_vm1 = vcmask (!%p195_p3), 72704  }
   0x7   : > { %198 = sbr.rel (%p195_p3) target bundleno = 969 (0x3c9), region = 36  ;;  %p227_p4 = scmp.lt.s32.totalorder (!%p195_p3), %s1400_s21, 15  ;;  %1475 = vmatprep.subr.bf16.mxu0 (!%p195_p3), %v1573_v0  ;;  %1485 = vmatprep.subr.bf16.mxu1 (!%p195_p3), %v1573_v0  ;;  %v1582_v9 = vld [vmem:[%s1992_s2] sm:$0xff] (!%p195_p3)  }
   0x8   : > { %1476 = vmatpush3.bf16.msra.mxu0 (!%p195_p3), %v1573_v0  ;;  %1486 = vmatpush3.bf16.msra.mxu1 (!%p195_p3), %v1573_v0  ;;  %s1641_s8 = smov (!%p195_p3), 119   ;;  %p241_p5 = scmp.lt.s32.totalorder (!%p195_p3), %s1630_s15, 1 }
   0xe   : > { %s2000_s21 = smov (!%p227_p4, %s1400_s21), 15  ;;  %s2002_s15 = smov (!%p241_p5, %s1630_s15), 1 }
   0xf   : > { %s1401_s22 = sshll.u32 %s2000_s21, 2  ;;  %s243_s11 = scalar_lea.vmem %s1994_s4, %s2002_s15 }
  0x10   : > { %s230_s25 = scalar_lea.vmem %s1990_s0, %s1401_s22  ;;  %s238_s28 = scalar_lea.vmem %s1991_s1, %s1401_s22 }
  0x11   : > { %v1574_v1 = vld [vmem:[%s230_s25] sm:$0xff]   ;;  %v1576_v3 = vld [vmem:[%s230_s25 + $0x8] sm:$0xff]   ;;  %v1578_v5 = vld [vmem:[%s230_s25 + $0x10] sm:$0xff]  }
  0x12   : > { %v1575_v2 = vld [vmem:[%s238_s28] sm:$0xff]   ;;  %1477 = vmatprep.mubr.msk.bf16.mxu0 %vm292_vm0, %v1574_v1  ;;  %v1577_v4 = vld [vmem:[%s238_s28 + $0x8] sm:$0xff]   ;;  %v1580_v6 = vld [vmem:[%s238_s28 + $0x10] sm:$0xff]  }
  0x13   : > { %1487 = vmatprep.mubr.msk.bf16.mxu1 %vm292_vm0, %v1575_v2  ;;  %1478 = vmatmul.mubr.msk.bf16.vlgmr.msra.gmra.mrb[0].mxu0 %vm292_vm0, %v1576_v3  ;;  %v1579_v7 = vld [vmem:[%s230_s25 + $0x18] sm:$0xff]  }
  0x14   : > { %1488 = vmatmul.mubr.msk.bf16.vlgmr.msra.gmra.mrb[0].mxu1 %vm292_vm0, %v1577_v4  ;;  %1481 = vmatprep.mubr.msk.bf16.mxu0 %vm292_vm0, %v1578_v5  ;;  %v1581_v8 = vld [vmem:[%s238_s28 + $0x18] sm:$0xff]  }
  0x15   : > { %1491 = vmatprep.mubr.msk.bf16.mxu1 %vm292_vm0, %v1580_v6 }
  0x1b   : > { %1482 = vmatmul.mubr.msk.bf16.gmra.mrb[4].mxu0 %vm292_vm0, %v1579_v7 }
  0x1c   : > { %1492 = vmatmul.mubr.msk.bf16.gmra.mrb[4].mxu1 %vm292_vm0, %v1581_v8  ;;  %1497 = vmatprep.mubr.msk.bf16.mxu0 %vm292_vm0, %v1582_v9 }
  0x1d   : > { %1503 = vmatprep.mubr.msk.bf16.mxu1 %vm292_vm0, %v1582_v9 }
  0xe6   : > { %v1479_v10 = vpop.f32.mrb[0].mxu0 }
  0xe7   : > { %v1489_v11 = vpop.f32.mrb[0].mxu1  ;;  %v339_v12 = vpop.f32.mrb[1].mxu0 }
  0xe8   : > { %v448_v13 = vpop.f32.mrb[1].mxu1  ;;  %v1480_v14 = vpop.f32.mrb[2].mxu0 }
  0xe9   : > { %v371_v15 = vpack.c.bf16 %v1480_v14, %v1479_v10  ;;  %v1490_v16 = vpop.f32.mrb[2].mxu1  ;;  %v342_v17 = vpop.f32.mrb[3].mxu0 }
  0xea   : > { %v480_v18 = vpack.c.bf16 %v1490_v16, %v1489_v11  ;;  %v370_v19 = vpack.c.bf16 %v342_v17, %v339_v12  ;;  %v451_v20 = vpop.f32.mrb[3].mxu1 }
  0xeb   : > { %v479_v21 = vpack.c.bf16 %v451_v20, %v448_v13 }
  0xec   : > { %1495 = vmatprep.subr.bf16.mxu0 %v370_v19 }
  0xed   : > { %1501 = vmatprep.subr.bf16.mxu1 %v479_v21  ;;  %1496 = vmatpush3.bf16.msra.mxu0 %v370_v19 }
  0xee   : > { %1502 = vmatpush3.bf16.msra.mxu1 %v479_v21  ;;  %1507 = vmatprep.subr.bf16.mxu0 %v371_v15  ;;  %v1483_v23 = vpop.f32.mrb[4].mxu0 }
  0xef   : > { %1513 = vmatprep.subr.bf16.mxu1 %v480_v18  ;;  %v355_v24 = vpop.f32.mrb[5].mxu0  ;;  %v1493_v25 = vpop.f32.mrb[4].mxu1 }
  0xf0   : > { %1498 = vmatmul.mubr.msk.bf16.vlgmr.msra.gmra.mrb[8].mxu0 %vm292_vm0, %v1583_v22  ;;  %v1484_v26 = vpop.f32.mrb[6].mxu0  ;;  %v464_v27 = vpop.f32.mrb[5].mxu1 }
  0xf1   : > { %1504 = vmatmul.mubr.msk.bf16.vlgmr.msra.gmra.mrb[8].mxu1 %vm292_vm0, %v1583_v22  ;;  %1508 = vmatpush3.bf16.msra.mxu0 %v371_v15  ;;  %v373_v28 = vpack.c.bf16 %v1484_v26, %v1483_v23  ;;  %v358_v29 = vpop.f32.mrb[7].mxu0  ;;  %v1494_v30 = vpop.f32.mrb[6].mxu1  ;;  %v1642_v15 = vmov 0.0  }
  0xf2   : > { %1514 = vmatpush3.bf16.msra.mxu1 %v480_v18  ;;  %1509 = vmatprep.mubr.msk.bf16.mxu0 %vm292_vm0, %v1582_v9  ;;  %v372_v31 = vpack.c.bf16 %v358_v29, %v355_v24  ;;  %v482_v32 = vpack.c.bf16 %v1494_v30, %v1493_v25  ;;  %v467_v33 = vpop.f32.mrb[7].mxu1  ;;  %250 = vst.msk [vmem:[#allocation2] sm:$0xff] %vm249_vm1, %v1642_v15  ;;  %251 = vst.msk [vmem:[#allocation2 + $0x8] sm:$0xff] %vm249_vm1, %v1642_v15 }
  0xf3   : > { %1515 = vmatprep.mubr.msk.bf16.mxu1 %vm292_vm0, %v1582_v9  ;;  %v481_v34 = vpack.c.bf16 %v467_v33, %v464_v27 }
  0xf4   : > { %1519 = vmatprep.subr.bf16.mxu0 %v372_v31 }
  0xf5   : > { %1525 = vmatprep.subr.bf16.mxu1 %v481_v34 }
  0xf8   : > { %1510 = vmatmul.mubr.msk.bf16.vlgmr.msra.gmra.mrb[12].mxu0 %vm292_vm0, %v1583_v22 }
  0xf9   : > { %1516 = vmatmul.mubr.msk.bf16.vlgmr.msra.gmra.mrb[12].mxu1 %vm292_vm0, %v1583_v22  ;;  %1520 = vmatpush3.bf16.msra.mxu0 %v372_v31 }
  0xfa   : > { %1521 = vmatprep.mubr.msk.bf16.mxu0 %vm292_vm0, %v1582_v9  ;;  %1526 = vmatpush3.bf16.msra.mxu1 %v481_v34 }
  0xfb   : > { %1527 = vmatprep.mubr.msk.bf16.mxu1 %vm292_vm0, %v1582_v9  ;;  %1531 = vmatprep.subr.bf16.mxu0 %v373_v28 }
  0xfc   : > { %1537 = vmatprep.subr.bf16.mxu1 %v482_v32 }
 0x100   : > { %1522 = vmatmul.mubr.msk.bf16.vlgmr.msra.gmra.mrb[16].mxu0 %vm292_vm0, %v1583_v22 }
 0x101   : > { %1528 = vmatmul.mubr.msk.bf16.vlgmr.msra.gmra.mrb[16].mxu1 %vm292_vm0, %v1583_v22  ;;  %1532 = vmatpush3.bf16.msra.mxu0 %v373_v28 }
 0x102   : > { %1533 = vmatprep.mubr.msk.bf16.mxu0 %vm292_vm0, %v1582_v9  ;;  %1538 = vmatpush3.bf16.msra.mxu1 %v482_v32 }
 0x103   : > { %1539 = vmatprep.mubr.msk.bf16.mxu1 %vm292_vm0, %v1582_v9 }
 0x108   : > { %1534 = vmatmul.mubr.msk.bf16.vlgmr.msra.gmra.mrb[20].mxu0 %vm292_vm0, %v1583_v22 }
 0x109   : > { %1540 = vmatmul.mubr.msk.bf16.vlgmr.msra.gmra.mrb[20].mxu1 %vm292_vm0, %v1583_v22 }
 0x1c3   : > { %v1499_v35 = vpop.f32.mrb[8].mxu0 }
 0x1c4   : > { %v1505_v36 = vpop.f32.mrb[8].mxu1  ;;  %558 = vrot.lane.b32.xlu0 %v1499_v35, %s1640_s7  ;;  %v1730_v37 = vpop.f32.mrb[9].mxu0 }
 0x1c5   : > { %653 = vrot.lane.b32.xlu1 %v1505_v36, %s1640_s7  ;;  %v1733_v38 = vpop.f32.mrb[9].mxu1  ;;  %v1500_v39 = vpop.f32.mrb[10].mxu0 }
 0x1c6   : > { %v1506_v40 = vpop.f32.mrb[10].mxu1  ;;  %v1735_v41 = vpop.f32.mrb[11].mxu0 }
 0x1c7   : > { %v1737_v42 = vpop.f32.mrb[11].mxu1 }
 0x1c8   : > { %560 = vrot.lane.b32.xlu0 %v1500_v39, %s1640_s7 }
 0x1c9   : > { %655 = vrot.lane.b32.xlu1 %v1506_v40, %s1640_s7 }
 0x1cb   : > { %v1511_v43 = vpop.f32.mrb[12].mxu0 }
 0x1cc   : > { %759 = vrot.lane.b32.xlu0 %v1511_v43, %s1640_s7  ;;  %v1742_v44 = vpop.f32.mrb[13].mxu0  ;;  %v1517_v45 = vpop.f32.mrb[12].mxu1 }
 0x1cd   : > { %v1512_v46 = vpop.f32.mrb[14].mxu0  ;;  %v1744_v47 = vpop.f32.mrb[13].mxu1 }
 0x1ce   : > { %761 = vrot.lane.b32.xlu1 %v1512_v46, %s1640_s7  ;;  %v1518_v48 = vpop.f32.mrb[14].mxu1  ;;  %v1747_v49 = vpop.f32.mrb[15].mxu0 }
 0x1cf   : > { %v1749_v50 = vpop.f32.mrb[15].mxu1 }
 0x1d0   : > { %854 = vrot.lane.b32.xlu0 %v1517_v45, %s1640_s7 }
 0x1d2   : > { %856 = vrot.lane.b32.xlu1 %v1518_v48, %s1640_s7 }
 0x1d3   : > { %v1523_v51 = vpop.f32.mrb[16].mxu0 }
 0x1d4   : > { %959 = vrot.lane.b32.xlu0 %v1523_v51, %s1640_s7  ;;  %v1754_v52 = vpop.f32.mrb[17].mxu0  ;;  %v1529_v53 = vpop.f32.mrb[16].mxu1 }
 0x1d5   : > { %v1524_v54 = vpop.f32.mrb[18].mxu0  ;;  %v1756_v55 = vpop.f32.mrb[17].mxu1 }
 0x1d6   : > { %961 = vrot.lane.b32.xlu1 %v1524_v54, %s1640_s7  ;;  %v1530_v56 = vpop.f32.mrb[18].mxu1  ;;  %v1759_v57 = vpop.f32.mrb[19].mxu0 }
 0x1d7   : > { %v1761_v58 = vpop.f32.mrb[19].mxu1 }
 0x1d8   : > { %1054 = vrot.lane.b32.xlu0 %v1529_v53, %s1640_s7 }
 0x1da   : > { %1056 = vrot.lane.b32.xlu1 %v1530_v56, %s1640_s7 }
 0x1db   : > { %v1535_v59 = vpop.f32.mrb[20].mxu0 }
 0x1dc   : > { %1159 = vrot.lane.b32.xlu0 %v1535_v59, %s1640_s7  ;;  %v1766_v60 = vpop.f32.mrb[21].mxu0  ;;  %v1768_v61 = vpop.f32.mrb[20].mxu1 }
 0x1dd   : > { %v1536_v62 = vpop.f32.mrb[22].mxu0  ;;  %v1770_v63 = vpop.f32.mrb[21].mxu1 }
 0x1de   : > { %1161 = vrot.lane.b32.xlu1 %v1536_v62, %s1640_s7  ;;  %v1773_v0 = vpop.f32.mrb[22].mxu1  ;;  %v1775_v1 = vpop.f32.mrb[23].mxu0 }
 0x1df   : > { %v1777_v2 = vpop.f32.mrb[23].mxu1 }
 0x1e0   : > { %1254 = vrot.lane.b32.xlu0 %v1768_v61, %s1640_s7 }
 0x1e2   : > { %1256 = vrot.lane.b32.xlu1 %v1773_v0, %s1640_s7 }
 0x1e4   : > { %550 = vrot.lane.b32.xlu0 %v1499_v35, %s1641_s8 }
 0x1e6   : > { %552 = vrot.lane.b32.xlu1 %v1500_v39, %s1641_s8 }
 0x1e8   : > { %645 = vrot.lane.b32.xlu0 %v1505_v36, %s1641_s8 }
 0x1ea   : > { %647 = vrot.lane.b32.xlu1 %v1506_v40, %s1641_s8 }
 0x1ec   : > { %751 = vrot.lane.b32.xlu0 %v1511_v43, %s1641_s8 }
 0x1ee   : > { %753 = vrot.lane.b32.xlu1 %v1512_v46, %s1641_s8 }
 0x1f0   : > { %846 = vrot.lane.b32.xlu0 %v1517_v45, %s1641_s8 }
 0x1f2   : > { %848 = vrot.lane.b32.xlu1 %v1518_v48, %s1641_s8 }
 0x1f4   : > { %951 = vrot.lane.b32.xlu0 %v1523_v51, %s1641_s8 }
 0x1f6   : > { %953 = vrot.lane.b32.xlu1 %v1524_v54, %s1641_s8 }
 0x1f8   : > { %1046 = vrot.lane.b32.xlu0 %v1529_v53, %s1641_s8 }
 0x1fa   : > { %1048 = vrot.lane.b32.xlu1 %v1530_v56, %s1641_s8 }
 0x236   : > { %v559_v3 = vpop.permute.xlu0 %558 }
 0x237   : > { %v654_v4 = vpop.permute.xlu1 %653  ;;  %v564_v5 = vadd.f32 %v559_v3, %v1730_v37 }
 0x238   : > { %v659_v6 = vadd.f32 %v654_v4, %v1733_v38 }
 0x239   : > { %v568_v7 = vmul.f32 %v564_v5, %v564_v5 }
 0x23a   : > { %v561_v8 = vpop.permute.xlu0 %560  ;;  %v663_v11 = vmul.f32 %v659_v6, %v659_v6 }
 0x23b   : > { %v656_v9 = vpop.permute.xlu1 %655  ;;  %v565_v10 = vadd.f32 %v561_v8, %v1735_v41  ;;  %572 = vrot.lane.b32.xlu0 %v568_v7, %s1641_s8 }
 0x23c   : > { %v660_v12 = vadd.f32 %v656_v9, %v1737_v42 }
 0x23d   : > { %v569_v13 = vmul.f32 %v565_v10, %v565_v10 }
 0x23e   : > { %v760_v14 = vpop.permute.xlu0 %759  ;;  %v664_v17 = vmul.f32 %v660_v12, %v660_v12 }
 0x23f   : > { %667 = vrot.lane.b32.xlu0 %v663_v11, %s1641_s8  ;;  %574 = vrot.lane.b32.xlu1 %v569_v13, %s1641_s8  ;;  %v765_v18 = vadd.f32 %v760_v14, %v1742_v44 }
 0x240   : > { %v762_v16 = vpop.permute.xlu1 %761 }
 0x241   : > { %v769_v21 = vmul.f32 %v765_v18, %v765_v18  ;;  %v766_v22 = vadd.f32 %v762_v16, %v1747_v49 }
 0x242   : > { %v855_v19 = vpop.permute.xlu0 %854 }
 0x243   : > { %1151 = vrot.lane.b32.xlu0 %v1535_v59, %s1641_s8  ;;  %669 = vrot.lane.b32.xlu1 %v664_v17, %s1641_s8  ;;  %v860_v23 = vadd.f32 %v855_v19, %v1744_v47  ;;  %v770_v26 = vmul.f32 %v766_v22, %v766_v22 }
 0x244   : > { %v857_v20 = vpop.permute.xlu1 %856 }
 0x245   : > { %v864_v27 = vmul.f32 %v860_v23, %v860_v23  ;;  %v861_v28 = vadd.f32 %v857_v20, %v1749_v50 }
 0x246   : > { %v960_v24 = vpop.permute.xlu0 %959 }
 0x247   : > { %773 = vrot.lane.b32.xlu0 %v769_v21, %s1641_s8  ;;  %1153 = vrot.lane.b32.xlu1 %v1536_v62, %s1641_s8  ;;  %v965_v29 = vadd.f32 %v960_v24, %v1754_v52  ;;  %v865_v31 = vmul.f32 %v861_v28, %v861_v28 }
 0x248   : > { %v962_v25 = vpop.permute.xlu1 %961 }
 0x249   : > { %v969_v32 = vmul.f32 %v965_v29, %v965_v29  ;;  %v966_v33 = vadd.f32 %v962_v25, %v1759_v57 }
 0x24a   : > { %v1055_v30 = vpop.permute.xlu0 %1054 }
 0x24b   : > { %868 = vrot.lane.b32.xlu0 %v864_v27, %s1641_s8  ;;  %775 = vrot.lane.b32.xlu1 %v770_v26, %s1641_s8  ;;  %v1060_v34 = vadd.f32 %v1055_v30, %v1756_v55  ;;  %v970_v39 = vmul.f32 %v966_v33, %v966_v33 }
 0x24c   : > { %v1057_v35 = vpop.permute.xlu1 %1056 }
 0x24d   : > { %v1064_v40 = vmul.f32 %v1060_v34, %v1060_v34  ;;  %v1061_v43 = vadd.f32 %v1057_v35, %v1761_v58 }
 0x24e   : > { %v1160_v36 = vpop.permute.xlu0 %1159 }
 0x24f   : > { %973 = vrot.lane.b32.xlu0 %v969_v32, %s1641_s8  ;;  %870 = vrot.lane.b32.xlu1 %v865_v31, %s1641_s8  ;;  %v1065_v46 = vmul.f32 %v1061_v43, %v1061_v43  ;;  %v1165_v48 = vadd.f32 %v1160_v36, %v1766_v60 }
 0x250   : > { %v1162_v45 = vpop.permute.xlu1 %1161 }
 0x251   : > { %v1169_v53 = vmul.f32 %v1165_v48, %v1165_v48  ;;  %v1166_v54 = vadd.f32 %v1162_v45, %v1775_v1 }
 0x252   : > { %v1255_v51 = vpop.permute.xlu0 %1254 }
 0x253   : > { %1068 = vrot.lane.b32.xlu0 %v1064_v40, %s1641_s8  ;;  %975 = vrot.lane.b32.xlu1 %v970_v39, %s1641_s8  ;;  %v1260_v56 = vadd.f32 %v1255_v51, %v1770_v63  ;;  %v1170_v62 = vmul.f32 %v1166_v54, %v1166_v54 }
 0x254   : > { %v1257_v59 = vpop.permute.xlu1 %1256 }
 0x255   : > { %v1264_v3 = vmul.f32 %v1260_v56, %v1260_v56  ;;  %v1261_v4 = vadd.f32 %v1257_v59, %v1777_v2 }
 0x256   : > { %v551_v5 = vpop.permute.xlu0 %550 }
 0x257   : > { %1246 = vrot.lane.b32.xlu0 %v1768_v61, %s1641_s8  ;;  %1070 = vrot.lane.b32.xlu1 %v1065_v46, %s1641_s8  ;;  %v1265_v61 = vmul.f32 %v1261_v4, %v1261_v4  ;;  %v556_v14 = vsub.f32 %v1730_v37, %v551_v5 }
 0x258   : > { %v553_v6 = vpop.permute.xlu1 %552 }
 0x259   : > { %v566_v16 = vmul.f32 %v556_v14, %v556_v14  ;;  %v557_v17 = vsub.f32 %v1735_v41, %v553_v6  ;;  %v689_v14 = vld [vmem:[#allocation2] sm:$0xff] }
 0x25a   : > { %v646_v7 = vpop.permute.xlu0 %645 }
 0x25b   : > { %1173 = vrot.lane.b32.xlu0 %v1169_v53, %s1641_s8  ;;  %1248 = vrot.lane.b32.xlu1 %v1773_v0, %s1641_s8  ;;  %v651_v18 = vsub.f32 %v1733_v38, %v646_v7  ;;  %v567_v22 = vmul.f32 %v557_v17, %v557_v17 }
 0x25c   : > { %v648_v8 = vpop.permute.xlu1 %647 }
 0x25d   : > { %v661_v23 = vmul.f32 %v651_v18, %v651_v18  ;;  %v652_v24 = vsub.f32 %v1737_v42, %v648_v8 }
 0x25e   : > { %v752_v9 = vpop.permute.xlu0 %751 }
 0x25f   : > { %1268 = vrot.lane.b32.xlu0 %v1264_v3, %s1641_s8  ;;  %1175 = vrot.lane.b32.xlu1 %v1170_v62, %s1641_s8  ;;  %v662_v37 = vmul.f32 %v652_v24, %v652_v24  ;;  %v757_v29 = vsub.f32 %v1742_v44, %v752_v9 }
 0x260   : > { %v754_v10 = vpop.permute.xlu1 %753 }
 0x261   : > { %v767_v31 = vmul.f32 %v757_v29, %v757_v29  ;;  %v758_v32 = vsub.f32 %v1747_v49, %v754_v10 }
 0x262   : > { %v847_v11 = vpop.permute.xlu0 %846 }
 0x263   : > { %1270 = vrot.lane.b32.xlu1 %v1265_v61, %s1641_s8  ;;  %v852_v42 = vsub.f32 %v1744_v47, %v847_v11  ;;  %v768_v45 = vmul.f32 %v758_v32, %v758_v32 }
 0x264   : > { %v849_v12 = vpop.permute.xlu1 %848 }
 0x265   : > { %v853_v33 = vsub.f32 %v1749_v50, %v849_v12  ;;  %v862_v46 = vmul.f32 %v852_v42, %v852_v42 }
 0x266   : > { %v952_v0 = vpop.permute.xlu0 %951 }
 0x267   : > { %v957_v34 = vsub.f32 %v1754_v52, %v952_v0  ;;  %v863_v47 = vmul.f32 %v853_v33, %v853_v33 }
 0x268   : > { %v954_v13 = vpop.permute.xlu1 %953 }
 0x269   : > { %v958_v44 = vsub.f32 %v1759_v57, %v954_v13  ;;  %v967_v49 = vmul.f32 %v957_v34, %v957_v34 }
 0x26a   : > { %v1047_v15 = vpop.permute.xlu0 %1046 }
 0x26b   : > { %v968_v48 = vmul.f32 %v958_v44, %v958_v44  ;;  %v1052_v50 = vsub.f32 %v1756_v55, %v1047_v15 }
 0x26c   : > { %v1049_v19 = vpop.permute.xlu1 %1048 }
 0x26d   : > { %v1053_v57 = vsub.f32 %v1761_v58, %v1049_v19 }
 0x2ad   : > { %v573_v20 = vpop.permute.xlu0 %572 }
 0x2ae   : > { %v578_v21 = vadd.f32 %v573_v20, %v566_v16 }
 0x2b0   : > { %1584 = vrsqrt.f32 %v578_v21  ;;  %vm582_vm2 = vcmp.eq.f32.partialorder %v578_v21, inf  ;;  %vm584_vm3 = vcmp.eq.f32.partialorder %v578_v21, 0.0  ;;  %v585_v3 = vand.u32 2147483648, %v578_v21 }
 0x2b1   : > { %v668_v25 = vpop.permute.xlu0 %667  ;;  %v575_v26 = vpop.permute.xlu1 %574 }
 0x2b2   : > { %v673_v27 = vadd.f32 %v668_v25, %v661_v23  ;;  %v1839_v28 = vadd.f32 %v575_v26, %v567_v22  ;;  %v1062_v23 = vmul.f32 %v1052_v50, %v1052_v50 }
 0x2b4   : > { %1586 = vrsqrt.f32 %v673_v27  ;;  %vm677_vm4 = vcmp.eq.f32.partialorder %v673_v27, inf  ;;  %v680_v61 = vand.u32 2147483648, %v673_v27  ;;  %vm679_vm5 = vcmp.eq.f32.partialorder %v673_v27, 0.0 }
 0x2b5   : > { %1588 = vrsqrt.f32 %v1839_v28  ;;  %v1152_v38 = vpop.permute.xlu0 %1151  ;;  %v670_v41 = vpop.permute.xlu1 %669  ;;  %vm589_vm6 = vcmp.eq.f32.partialorder %v1839_v28, inf  ;;  %vm591_vm7 = vcmp.eq.f32.partialorder %v1839_v28, 0.0  ;;  %v592_v10 = vand.u32 2147483648, %v1839_v28 }
 0x2b6   : > { %v1843_v30 = vadd.f32 %v670_v41, %v662_v37  ;;  %v1157_v15 = vsub.f32 %v1766_v60, %v1152_v38  ;;  %v690_v37 = vld [vmem:[#allocation2 + $0x8] sm:$0xff]  ;;  %v1063_v41 = vmul.f32 %v1053_v57, %v1053_v57 }
 0x2b8   : > { %1590 = vrsqrt.f32 %v1843_v30  ;;  %vm684_vm8 = vcmp.eq.f32.partialorder %v1843_v30, inf  ;;  %v687_v16 = vand.u32 2147483648, %v1843_v30  ;;  %vm686_vm9 = vcmp.eq.f32.partialorder %v1843_v30, 0.0 }
 0x2b9   : > { %v774_v35 = vpop.permute.xlu0 %773  ;;  %v1851_v36 = vpop.permute.xlu1 %1153 }
 0x2ba   : > { %v1585_v39 = vpop.eup %1584  ;;  %v1853_v40 = vadd.f32 %v774_v35, %v767_v31  ;;  %v1158_v33 = vsub.f32 %v1775_v1, %v1851_v36 }
 0x2bb   : > { %v581_v43 = vmul.f32 %v1585_v39, %v578_v21 }
 0x2bc   : > { %1592 = vrsqrt.f32 %v1853_v40  ;;  %vm783_vm10 = vcmp.eq.f32.partialorder %v1853_v40, inf  ;;  %vm785_vm11 = vcmp.eq.f32.partialorder %v1853_v40, 0.0 }
 0x2bd   : > { %v869_v51 = vpop.permute.xlu0 %868  ;;  %v776_v52 = vpop.permute.xlu1 %775  ;;  %v583_v62 = vsel %vm582_vm2, %v578_v21, %v581_v43  ;;  %v786_v43 = vand.u32 2147483648, %v1853_v40 }
 0x2be   : > { %v1587_v53 = vpop.eup %1586  ;;  %v1858_v54 = vadd.f32 %v869_v51, %v862_v46  ;;  %v1860_v56 = vadd.f32 %v776_v52, %v768_v45  ;;  %v586_v8 = vsel %vm584_vm3, %v585_v3, %v583_v62  ;;  %v1168_v51 = vmul.f32 %v1158_v33, %v1158_v33 }
 0x2bf   : > { %v1589_v59 = vpop.eup %1588  ;;  %v676_v4 = vmul.f32 %v1587_v53, %v673_v27 }
 0x2c0   : > { %v588_v5 = vmul.f32 %v1589_v59, %v1839_v28  ;;  %1594 = vrsqrt.f32 %v1858_v54  ;;  %vm878_vm12 = vcmp.eq.f32.partialorder %v1858_v54, inf  ;;  %v881_v45 = vand.u32 2147483648, %v1858_v54 }
 0x2c1   : > { %v678_v55 = vsel %vm677_vm4, %v673_v27, %v676_v4  ;;  %1596 = vrsqrt.f32 %v1860_v56  ;;  %v974_v58 = vpop.permute.xlu0 %973  ;;  %v871_v6 = vpop.permute.xlu1 %870  ;;  %vm880_vm13 = vcmp.eq.f32.partialorder %v1858_v54, 0.0  ;;  %vm790_vm14 = vcmp.eq.f32.partialorder %v1860_v56, inf }
 0x2c2   : > { %v1591_v7 = vpop.eup %1590  ;;  %v681_v9 = vsel %vm679_vm5, %v680_v61, %v678_v55  ;;  %v590_v12 = vsel %vm589_vm6, %v1839_v28, %v588_v5  ;;  %v1870_v13 = vadd.f32 %v974_v58, %v967_v49  ;;  %v1875_v17 = vadd.f32 %v871_v6, %v863_v47 }
 0x2c3   : > { %v691_v11 = vsub.f32 %v586_v8, %v681_v9  ;;  %v683_v0 = vmul.f32 %v1591_v7, %v1843_v30  ;;  %v593_v60 = vsel %vm591_vm7, %v592_v10, %v590_v12  ;;  %vm792_vm15 = vcmp.eq.f32.partialorder %v1860_v56, 0.0 }
 0x2c4   : > { %1598 = vrsqrt.f32 %v1870_v13  ;;  %v793_v62 = vand.u32 2147483648, %v1860_v56  ;;  %vm983_vm0 = vcmp.eq.f32.partialorder %v1870_v13, inf  ;;  %v986_v6 = vand.u32 2147483648, %v1870_v13 }
 0x2c5   : > { %v693_v18 = vand.u32 2147483647, %v691_v11  ;;  %v685_v19 = vsel %vm684_vm8, %v1843_v30, %v683_v0  ;;  %v1069_v20 = vpop.permute.xlu0 %1068  ;;  %v976_v21 = vpop.permute.xlu1 %975  ;;  %1600 = vrsqrt.f32 %v1875_v17  ;;  %v1167_v30 = vmul.f32 %v1157_v15, %v1157_v15 }
 0x2c6   : > { %v1593_v22 = vpop.eup %1592  ;;  %v688_v24 = vsel %vm686_vm9, %v687_v16, %v685_v19  ;;  %v1884_v29 = vadd.f32 %v1069_v20, %v1062_v23  ;;  %v1886_v38 = vadd.f32 %v976_v21, %v968_v48  ;;  %vm885_vm2 = vcmp.eq.f32.partialorder %v1875_v17, inf }
 0x2c7   : > { %v695_v25 = vadd.f32 %v693_v18, %v689_v14  ;;  %v692_v26 = vsub.f32 %v593_v60, %v688_v24  ;;  %v782_v27 = vmul.f32 %v1593_v22, %v1853_v40  ;;  %v888_v7 = vand.u32 2147483648, %v1875_v17 }
 0x2c8   : > { %1602 = vrsqrt.f32 %v1884_v29  ;;  %vm887_vm3 = vcmp.eq.f32.partialorder %v1875_v17, 0.0  ;;  %vm1078_vm4 = vcmp.eq.f32.partialorder %v1884_v29, inf  ;;  %vm985_vm5 = vcmp.eq.f32.partialorder %v1870_v13, 0.0 }
 0x2c9   : > { %698 = vst.msk [vmem:[#allocation2] sm:$0xff] %vm249_vm1, %v695_v25  ;;  %v694_v31 = vand.u32 2147483647, %v692_v26  ;;  %v1247_v32 = vpop.permute.xlu0 %1246  ;;  %v1071_v28 = vpop.permute.xlu1 %1070  ;;  %v784_v35 = vsel %vm783_vm10, %v1853_v40, %v782_v27  ;;  %1604 = vrsqrt.f32 %v1886_v38  ;;  %vm1080_vm6 = vcmp.eq.f32.partialorder %v1884_v29, 0.0 }
 0x2ca   : > { %v1595_v42 = vpop.eup %1594  ;;  %v1252_v36 = vsub.f32 %v1770_v63, %v1247_v32  ;;  %v1905_v47 = vadd.f32 %v1071_v28, %v1063_v41  ;;  %v787_v50 = vsel %vm785_vm11, %v786_v43, %v784_v35  ;;  %vm990_vm7 = vcmp.eq.f32.partialorder %v1886_v38, inf }
 0x2cb   : > { %v1597_v34 = vpop.eup %1596  ;;  %v696_v44 = vadd.f32 %v694_v31, %v690_v37  ;;  %v877_v39 = vmul.f32 %v1595_v42, %v1858_v54  ;;  %vm992_vm9 = vcmp.eq.f32.partialorder %v1886_v38, 0.0 }
 0x2cc   : > { %v789_v46 = vmul.f32 %v1597_v34, %v1860_v56  ;;  %1606 = vrsqrt.f32 %v1905_v47  ;;  %v1262_v40 = vmul.f32 %v1252_v36, %v1252_v36  ;;  %vm1085_vm8 = vcmp.eq.f32.partialorder %v1905_v47, inf }
 0x2cd   : > { %699 = vst.msk [vmem:[#allocation2 + $0x8] sm:$0xff] %vm249_vm1, %v696_v44  ;;  %v879_v1 = vsel %vm878_vm12, %v1858_v54, %v877_v39  ;;  %v1174_v49 = vpop.permute.xlu0 %1173  ;;  %v1249_v48 = vpop.permute.xlu1 %1248  ;;  %v1088_v28 = vand.u32 2147483648, %v1905_v47  ;;  %vm1087_vm10 = vcmp.eq.f32.partialorder %v1905_v47, 0.0 }
 0x2ce   : > { %v882_v52 = vsel %vm880_vm13, %v881_v45, %v879_v1  ;;  %v1909_v53 = vadd.f32 %v1174_v49, %v1167_v30  ;;  %v1599_v57 = vpop.eup %1598  ;;  %v791_v54 = vsel %vm790_vm14, %v1860_v56, %v789_v46  ;;  %v1253_v8 = vsub.f32 %v1777_v2, %v1249_v48 }
 0x2cf   : > { %v892_v59 = vsub.f32 %v787_v50, %v882_v52  ;;  %v1601_v63 = vpop.eup %1600  ;;  %v982_v4 = vmul.f32 %v1599_v57, %v1870_v13  ;;  %v794_v0 = vsel %vm792_vm15, %v793_v62, %v791_v54  ;;  %v1081_v56 = vand.u32 2147483648, %v1884_v29 }
 0x2d0   : > { %v884_v61 = vmul.f32 %v1601_v63, %v1875_v17  ;;  %1608 = vrsqrt.f32 %v1909_v53  ;;  %v890_v58 = vld [vmem:[#allocation2] sm:$0xff]  ;;  %v1263_v21 = vmul.f32 %v1253_v8, %v1253_v8  ;;  %vm1183_vm11 = vcmp.eq.f32.partialorder %v1909_v53, inf }
 0x2d1   : > { %v894_v3 = vand.u32 2147483647, %v892_v59  ;;  %v1269_v5 = vpop.permute.xlu0 %1268  ;;  %v1176_v55 = vpop.permute.xlu1 %1175  ;;  %v984_v2 = vsel %vm983_vm0, %v1870_v13, %v982_v4  ;;  %vm1185_vm13 = vcmp.eq.f32.partialorder %v1909_v53, 0.0  ;;  %v1303_v62 = vlaneseq }
 0x2d2   : > { %v886_v10 = vsel %vm885_vm2, %v1875_v17, %v884_v61  ;;  %v1926_v11 = vadd.f32 %v1269_v5, %v1262_v40  ;;  %v1603_v12 = vpop.eup %1602  ;;  %v1931_v15 = vadd.f32 %v1176_v55, %v1168_v51  ;;  %v987_v60 = vsel %vm985_vm5, %v986_v6, %v984_v2 }
 0x2d3   : > { %v896_v9 = vadd.f32 %v894_v3, %v890_v58  ;;  %v889_v14 = vsel %vm887_vm3, %v888_v7, %v886_v10  ;;  %v1605_v16 = vpop.eup %1604  ;;  %v1077_v17 = vmul.f32 %v1603_v12, %v1884_v29  ;;  %v1304_v8 = vand.u32 127, %v1303_v62 }
 0x2d4   : > { %v893_v18 = vsub.f32 %v794_v0, %v889_v14  ;;  %1610 = vrsqrt.f32 %v1926_v11  ;;  %v989_v20 = vmul.f32 %v1605_v16, %v1886_v38  ;;  %v891_v24 = vld [vmem:[#allocation2 + $0x8] sm:$0xff]  ;;  %vm1278_vm12 = vcmp.eq.f32.partialorder %v1926_v11, inf }
 0x2d5   : > { %898 = vst.msk [vmem:[#allocation2] sm:$0xff] %vm249_vm1, %v896_v9  ;;  %v1271_v19 = vpop.permute.xlu1 %1270  ;;  %1612 = vrsqrt.f32 %v1931_v15  ;;  %v1079_v23 = vsel %vm1078_vm4, %v1884_v29, %v1077_v17  ;;  %v993_v29 = vand.u32 2147483648, %v1886_v38  ;;  %vm1280_vm14 = vcmp.eq.f32.partialorder %v1926_v11, 0.0 }
 0x2d6   : > { %v895_v22 = vand.u32 2147483647, %v893_v18  ;;  %v1082_v25 = vsel %vm1080_vm6, %v1081_v56, %v1079_v23  ;;  %v1275_v26 = vadd.f32 %v1271_v19, %v1263_v21  ;;  %v1607_v27 = vpop.eup %1606  ;;  %v991_v30 = vsel %vm990_vm7, %v1886_v38, %v989_v20 }
 0x2d7   : > { %v1092_v41 = vsub.f32 %v987_v60, %v1082_v25  ;;  %v1084_v31 = vmul.f32 %v1607_v27, %v1905_v47  ;;  %v994_v35 = vsel %vm992_vm9, %v993_v29, %v991_v30  ;;  %v1186_v38 = vand.u32 2147483648, %v1909_v53 }
 0x2d8   : > { %v897_v37 = vadd.f32 %v895_v22, %v891_v24  ;;  %1614 = vrsqrt.f32 %v1275_v26  ;;  %vm1190_vm15 = vcmp.eq.f32.partialorder %v1931_v15, inf  ;;  %vm1285_vm0 = vcmp.eq.f32.partialorder %v1275_v26, inf }
 0x2d9   : > { %v1094_v32 = vand.u32 2147483647, %v1092_v41  ;;  %v1086_v33 = vsel %vm1085_vm8, %v1905_v47, %v1084_v31  ;;  %v1281_v47 = vand.u32 2147483648, %v1926_v11  ;;  %v1288_v5 = vand.u32 2147483648, %v1275_v26 }
 0x2da   : > { %v1609_v13 = vpop.eup %1608  ;;  %899 = vst.msk [vmem:[#allocation2 + $0x8] sm:$0xff] %vm249_vm1, %v897_v37  ;;  %v1089_v39 = vsel %vm1087_vm10, %v1088_v28, %v1086_v33  ;;  %vm1192_vm2 = vcmp.eq.f32.partialorder %v1931_v15, 0.0  ;;  %vm1287_vm3 = vcmp.eq.f32.partialorder %v1275_v26, 0.0  ;;  %vm1305_vm4 = vcmp.eq.s32.totalorder %v1304_v8, 0 }
 0x2db   : > { %v1182_v34 = vmul.f32 %v1609_v13, %v1909_v53  ;;  %v1093_v43 = vsub.f32 %v994_v35, %v1089_v39  ;;  %vm1306_vm5 = vcmp.eq.s32.totalorder %v1304_v8, 8  ;;  %v1643_v0 = vmov 2.0  }
 0x2dc   : > { %v1090_v42 = vld [vmem:[#allocation2] sm:$0xff]  ;;  %vm1307_vm6 = vmor %vm1305_vm4, %vm1306_vm5  ;;  %vm1326_vm7 = vcmask 0  }
 0x2dd   : > { %v1096_v44 = vadd.f32 %v1094_v32, %v1090_v42  ;;  %v1184_v1 = vsel %vm1183_vm11, %v1909_v53, %v1182_v34  ;;  %v1095_v49 = vand.u32 2147483647, %v1093_v43  ;;  %v1193_v53 = vand.u32 2147483648, %v1931_v15 }
 0x2de   : > { %v1611_v45 = vpop.eup %1610  ;;  %v1187_v57 = vsel %vm1185_vm13, %v1186_v38, %v1184_v1  ;;  %v1308_v14 = vsel %vm1307_vm6, 1.0, %v1643_v0 }
 0x2df   : > { %1098 = vst.msk [vmem:[#allocation2] sm:$0xff] %vm249_vm1, %v1096_v44  ;;  %v1613_v46 = vpop.eup %1612  ;;  %v1277_v36 = vmul.f32 %v1611_v45, %v1926_v11 }
 0x2e0   : > { %v1189_v48 = vmul.f32 %v1613_v46, %v1931_v15 }
 0x2e1   : > { %v1091_v50 = vld [vmem:[#allocation2 + $0x8] sm:$0xff]  ;;  %v1279_v51 = vsel %vm1278_vm12, %v1926_v11, %v1277_v36 }
 0x2e2   : > { %v1097_v52 = vadd.f32 %v1095_v49, %v1091_v50  ;;  %v1282_v59 = vsel %vm1280_vm14, %v1281_v47, %v1279_v51  ;;  %v1615_v63 = vpop.eup %1614  ;;  %v1191_v40 = vsel %vm1190_vm15, %v1931_v15, %v1189_v48 }
 0x2e3   : > { %v1292_v54 = vsub.f32 %v1187_v57, %v1282_v59  ;;  %v1284_v3 = vmul.f32 %v1615_v63, %v1275_v26  ;;  %v1194_v6 = vsel %vm1192_vm2, %v1193_v53, %v1191_v40 }
 0x2e4   : > { %1099 = vst.msk [vmem:[#allocation2 + $0x8] sm:$0xff] %vm249_vm1, %v1097_v52 }
 0x2e5   : > { %v1294_v61 = vand.u32 2147483647, %v1292_v54  ;;  %v1286_v55 = vsel %vm1285_vm0, %v1275_v26, %v1284_v3 }
 0x2e6   : > { %v1290_v4 = vld [vmem:[#allocation2] sm:$0xff]  ;;  %v1289_v7 = vsel %vm1287_vm3, %v1288_v5, %v1286_v55 }
 0x2e7   : > { %v1296_v58 = vadd.f32 %v1294_v61, %v1290_v4  ;;  %v1293_v9 = vsub.f32 %v1194_v6, %v1289_v7 }
 0x2e9   : > { %1298 = vst.msk [vmem:[#allocation2] sm:$0xff] %vm249_vm1, %v1296_v58  ;;  %v1295_v10 = vand.u32 2147483647, %v1293_v9 }
 0x2eb   : > { %v1291_v11 = vld [vmem:[#allocation2 + $0x8] sm:$0xff] }
 0x2ec   : > { %v1297_v12 = vadd.f32 %v1295_v10, %v1291_v11 }
 0x2ee   : > { %1299 = vst.msk [vmem:[#allocation2 + $0x8] sm:$0xff] %vm249_vm1, %v1297_v12 }
 0x2f0   : > { %v1309_v15 = vld [vmem:[#allocation2] sm:$0xff] }
 0x2f1   : > { %v1311_v16 = vmul.f32 %v1309_v15, %v1308_v14 }
 0x2f3   : > { %v1313_v17 = vsel %vm249_vm1, %v1311_v16, 0.0 }
 0x2f5   : > { %v1310_v2 = vld [vmem:[#allocation2 + $0x8] sm:$0xff] }
 0x2f6   : > { %v1312_v18 = vmul.f32 %v1310_v2, %v1308_v14 }
 0x2f8   : > { %v1314_v19 = vsel %vm249_vm1, %v1312_v18, 0.0 }
 0x2f9   : > { %v1315_v56 = vadd.f32 %v1314_v19, %v1313_v17 }
 0x2fb   : > { %1316 = vadd.xlane.f32.xlu0 %v1315_v56 }
 0x388   : > { %v1317_v20 = vpop.xlane.xlu0 %1316 }
 0x389   : > { %v1318_v21 = vrot.slane %v1317_v20, 4 }
 0x38b   : > { %v1319_v22 = vadd.f32 %v1318_v21, %v1317_v20 }
 0x38d   : > { %v1320_v23 = vrot.slane %v1319_v22, 2 }
 0x38f   : > { %v1321_v60 = vadd.f32 %v1320_v23, %v1319_v22 }
 0x391   : > { %v1322_v24 = vrot.slane %v1321_v60, 1 }
 0x393   : > { %v1323_v25 = vadd.f32 %v1322_v24, %v1321_v60 }
 0x395   : > { %1543 = vpush %v1323_v25 }
 0x3c6   : > { %s1544_s12 = spop %1543 }
 0x3c7   : > { %v1325_v26 = vstv %s1544_s12 }
 0x3c8   : > { %1327 = vst.msk [vmem:[%s243_s11] sm:$0x1] %vm1326_vm7, %v1325_v26 }
 0x3c9 PF: > { %s14_s17 = sadd.s32 1, %s1638_s17   ;;  %s1995_s15 = smov %s1634_s16 }
 0x3ca   : > { %p11_p6 = scmp.ge.s32.totalorder %s14_s17, 4   ;;  %s1996_s16 = smov %s1998_s18 }
 0x3cc   :  { %13 = sbr.rel (!%p11_p6) target bundleno = 2 (0x2), region = 77 }

</bundles_post_ra>
